<compile_context>
chip_gen: v5e
topology: v5e:2x2
jax: 0.10.0
libtpu: 0.0.40
codegen_flags: <defaults>
</compile_context>

<pallas_src>
import functools
import math

import jax
import jax.numpy as jnp
from jax.experimental import pallas as pl
from jax.experimental.pallas import tpu as pltpu


def _round_up(a, b):
    return (a + b - 1) // b * b


def _label_smoothing_kernel(x_ref, tgt_ref, out_ref, acc_ref, pad_ref, *,
                            tile_v, pad_tile, pad_col, padding_idx,
                            confidence, fill, const_term):
    # x_ref:   (TN, TV) log-probs tile (any float dtype; upcast to f32 here)
    # tgt_ref: (TN, 1) int32 targets for this row block
    # out_ref: (1, 8, 128) f32 per-N-block partial sum (only [0,0,0] is nonzero)
    # acc_ref: (TN, 1) f32 per-row accumulator of fill*sum(x) + (conf-fill)*x[tgt]
    # pad_ref: (TN, 1) f32 holding x[:, padding_idx] (captured at its single tile)
    j = pl.program_id(1)
    n_v = pl.num_programs(1)

    @pl.when(j == 0)
    def _init():
        acc_ref[...] = jnp.zeros_like(acc_ref)
        pad_ref[...] = jnp.zeros_like(pad_ref)

    x = x_ref[...].astype(jnp.float32)            # bf16 streamed, f32 math everywhere
    tgt = tgt_ref[...]                            # (TN, 1) int32
    tn, tv = x.shape

    # tile-local target column; out of [0, tv) means "target not in this tile"
    tgt_local = tgt - j * tile_v                  # (TN, 1) scalar-per-row op
    col = jax.lax.broadcasted_iota(jnp.int32, (tn, tv), 1)
    sx = jnp.sum(x, axis=1, keepdims=True)                               # XLU reduce
    st = jnp.sum(jnp.where(col == tgt_local, x, 0.0), axis=1, keepdims=True)
    acc_ref[...] += fill * sx + (confidence - fill) * st

    # padding column lives in exactly one statically-known V tile
    @pl.when(j == pad_tile)
    def _pad():
        pad_ref[...] = x[:, pad_col:pad_col + 1]

    @pl.when(j == n_v - 1)
    def _finalize():
        valid = tgt != padding_idx                        # padded rows contribute 0
        per_row = jnp.where(valid,
                            const_term - acc_ref[...] + fill * pad_ref[...],
                            0.0)
        block_sum = jnp.sum(per_row)
        sub = jax.lax.broadcasted_iota(jnp.int32, out_ref.shape, 1)
        lane = jax.lax.broadcasted_iota(jnp.int32, out_ref.shape, 2)
        out_ref[...] = jnp.where((sub == 0) & (lane == 0), block_sum, 0.0).astype(
            jnp.float32)


def label_smoothing_loss(x, target, *, size, padding_idx, smoothing,
                         tn=256, tv=4096, vmem_limit_bytes=48 * 1024 * 1024):
    """x: [N, size] log-probs (f32 or bf16), target: [N] int. Returns scalar f32 loss."""
    N, V = x.shape
    assert V == size

    confidence = 1.0 - float(smoothing)
    fill = float(smoothing) / (size - 2)
    # sum_v td*log(td) for one valid row; trace-time constant (handles smoothing=0 / =1)
    const_term = 0.0
    if confidence > 0.0:
        const_term += confidence * math.log(confidence)
    if fill > 0.0:
        const_term += (size - 2) * fill * math.log(fill)

    # --- choose tiles satisfying the (8, 128) constraint and pad if needed -----------
    tv_eff = min(_round_up(tv, 128), _round_up(V, 128))
    tn_eff = min(_round_up(tn, 8), _round_up(N, 8))
    # v7x megacore: make sure the parallel N axis has at least 2 blocks when possible
    if -(-N // tn_eff) < 2 and N > 8:
        tn_eff = _round_up(-(-N // 2), 8)
    Vp = _round_up(V, tv_eff)
    Np = _round_up(N, tn_eff)

    xp = x
    if (Np, Vp) != (N, V):
        # zero-padded columns/rows contribute exactly 0 to the closed-form loss
        xp = jnp.pad(x, ((0, Np - N), (0, Vp - V)))
    tgt = target.astype(jnp.int32)
    if Np != N:
        tgt = jnp.pad(tgt, (0, Np - N), constant_values=padding_idx)
    tgt2d = tgt.reshape(Np, 1)

    grid = (Np // tn_eff, Vp // tv_eff)
    pad_tile = int(padding_idx) // tv_eff
    pad_col = int(padding_idx) % tv_eff

    kernel = functools.partial(
        _label_smoothing_kernel,
        tile_v=tv_eff,
        pad_tile=pad_tile,
        pad_col=pad_col,
        padding_idx=int(padding_idx),
        confidence=confidence,
        fill=fill,
        const_term=const_term,
    )

    cost = pl.CostEstimate(
        flops=int(3 * Np * Vp),
        transcendentals=0,
        bytes_accessed=int(Np * Vp * xp.dtype.itemsize + Np * 4
                           + grid[0] * 8 * 128 * 4),
    )

    partials = pl.pallas_call(
        kernel,
        out_shape=jax.ShapeDtypeStruct((grid[0], 8, 128), jnp.float32),
        grid_spec=pltpu.PrefetchScalarGridSpec(
            num_scalar_prefetch=0,
            grid=grid,
            in_specs=[
                pl.BlockSpec((tn_eff, tv_eff), lambda i, j: (i, j)),
                pl.BlockSpec((tn_eff, 1), lambda i, j: (i, 0)),
            ],
            out_specs=pl.BlockSpec((1, 8, 128), lambda i, j: (i, 0, 0)),
            scratch_shapes=[pltpu.VMEM((tn_eff, 1), jnp.float32),
                            pltpu.VMEM((tn_eff, 1), jnp.float32)],
        ),
        compiler_params=pltpu.CompilerParams(
            dimension_semantics=("parallel", "arbitrary"),
            vmem_limit_bytes=vmem_limit_bytes,
        ),
        cost_estimate=cost,
    )(xp, tgt2d)

    # tiny finish-up reduction in XLA (all non-[*,0,0] entries are exact zeros)
    return jnp.sum(partials)


def _reference_loss(x, target, *, size, padding_idx, smoothing):
    # Pure-JAX mirror of the PyTorch module (builds true_dist explicitly).
    confidence = 1.0 - smoothing
    N, V = x.shape
    col = jnp.arange(V)[None, :]
    tgt = target[:, None]
    td = jnp.full((N, V), smoothing / (size - 2), jnp.float32)
    td = jnp.where(col == tgt, confidence, td)
    td = td.at[:, padding_idx].set(0.0)
    td = jnp.where(tgt == padding_idx, 0.0, td)
    contrib = jnp.where(td > 0, td * (jnp.log(jnp.where(td > 0, td, 1.0)) - x), 0.0)
    return jnp.sum(contrib)


if __name__ == "__main__":
    key = jax.random.PRNGKey(0)
    N, V = 100, 200          # N tokens, vocab size `size` (non-multiples exercise padding)
    smoothing = 0.1

    k1, k2 = jax.random.split(key)
    logits = jax.random.normal(k1, (N, V), dtype=jnp.float32)
    x = jax.nn.log_softmax(logits, axis=-1).astype(jnp.bfloat16)   # stream bf16 log-probs
    target = jax.random.randint(k2, (N,), 0, V, dtype=jnp.int32)

    ok = True
    # two padding_idx placements: tile 0 / col 0 and tile 1 / col 3 (V tiles of 128)
    for padding_idx in (0, 131):
        tgt_case = target.at[3].set(padding_idx).at[7].set(padding_idx)
        tgt_case = tgt_case.at[N - 1].set(padding_idx)

        # small tiles so the demo exercises a real 2x2 grid (N-parallel, V-reduction)
        loss = label_smoothing_loss(x, tgt_case, size=V, padding_idx=padding_idx,
                                    smoothing=smoothing, tn=64, tv=128)
        loss = jax.block_until_ready(loss)

        ref = _reference_loss(x.astype(jnp.float32), tgt_case, size=V,
                              padding_idx=padding_idx, smoothing=smoothing)
        ok = ok and bool(jnp.allclose(loss, ref, rtol=1e-4, atol=1e-4))
        assert ok, (padding_idx, loss, ref)

    print("KERNEL_OK")
</pallas_src>

<mosaic_0001>
module attributes {stable_mosaic.version = 11 : i64} {
  func.func @_label_smoothing_kernel(%arg0: i32, %arg1: i32, %arg2: memref<64x128xbf16, #tpu.memory_space<vmem>>, %arg3: memref<64x1xi32, #tpu.memory_space<vmem>>, %arg4: memref<1x8x128xf32, #tpu.memory_space<vmem>>, %arg5: memref<64x1xf32, #tpu.memory_space<vmem>>, %arg6: memref<64x1xf32, #tpu.memory_space<vmem>>) attributes {dimension_semantics = [#tpu.dimension_semantics<parallel>, #tpu.dimension_semantics<arbitrary>], iteration_bounds = array<i64: 2, 2>, scalar_prefetch = 0 : i64, scratch_operands = 2 : i64, tpu.core_type = #tpu.core_type<tc>, window_params = [{transform_indices = @transform_0, window_bounds = array<i64: 64, 128>}, {transform_indices = @transform_1, window_bounds = array<i64: 64, 1>}, {transform_indices = @transform_2, window_bounds = array<i64: 1, 8, 128>}]} {
    %c0_i32 = arith.constant 0 : i32
    %0 = arith.cmpi eq, %arg1, %c0_i32 : i32
    %1 = arith.extui %0 : i1 to i32
    %c0_i32_0 = arith.constant 0 : i32
    %2 = arith.cmpi ne, %1, %c0_i32_0 : i32
    scf.if %2 {
      %cst_15 = arith.constant 0.000000e+00 : f32
      %32 = vector.broadcast %cst_15 : f32 to vector<64x1xf32>
      %c0_16 = arith.constant 0 : index
      %c0_17 = arith.constant 0 : index
      %33 = vector.load %arg5[%c0_16, %c0_17] : memref<64x1xf32, #tpu.memory_space<vmem>>, vector<64x1xf32>
      tpu.vector_store %arg5[%c0_16, %c0_17], %32 {strides = array<i32>} : memref<64x1xf32, #tpu.memory_space<vmem>>, vector<64x1xf32>,
      %cst_18 = arith.constant 0.000000e+00 : f32
      %34 = vector.broadcast %cst_18 : f32 to vector<64x1xf32>
      %c0_19 = arith.constant 0 : index
      %c0_20 = arith.constant 0 : index
      %35 = vector.load %arg6[%c0_19, %c0_20] : memref<64x1xf32, #tpu.memory_space<vmem>>, vector<64x1xf32>
      tpu.vector_store %arg6[%c0_19, %c0_20], %34 {strides = array<i32>} : memref<64x1xf32, #tpu.memory_space<vmem>>, vector<64x1xf32>,
    } else {
    }
    %c0 = arith.constant 0 : index
    %c0_1 = arith.constant 0 : index
    %3 = vector.load %arg2[%c0, %c0_1] : memref<64x128xbf16, #tpu.memory_space<vmem>>, vector<64x128xbf16>
    %4 = arith.extf %3 : vector<64x128xbf16> to vector<64x128xf32>
    %c0_2 = arith.constant 0 : index
    %c0_3 = arith.constant 0 : index
    %5 = vector.load %arg3[%c0_2, %c0_3] : memref<64x1xi32, #tpu.memory_space<vmem>>, vector<64x1xi32>
    %c128_i32 = arith.constant 128 : i32
    %6 = arith.muli %arg1, %c128_i32 : i32
    %7 = vector.broadcast %6 : i32 to vector<64x1xi32>
    %8 = arith.subi %5, %7 : vector<64x1xi32>
    %9 = tpu.iota {dimensions = array<i32: 1>} : vector<64x128xi32>
    %cst = arith.constant dense<0.000000e+00> : vector<64xf32>
    %10 = vector.multi_reduction <add>, %4, %cst [1] : vector<64x128xf32> to vector<64xf32>
    %11 = vector.shape_cast %10 : vector<64xf32> to vector<64x1xf32>
    %12 = vector.broadcast %8 : vector<64x1xi32> to vector<64x128xi32>
    %13 = arith.cmpi eq, %9, %12 : vector<64x128xi32>
    %cst_4 = arith.constant 0.000000e+00 : f32
    %14 = vector.broadcast %cst_4 : f32 to vector<64x128xf32>
    %15 = arith.select %13, %4, %14 : vector<64x128xi1>, vector<64x128xf32>
    %cst_5 = arith.constant dense<0.000000e+00> : vector<64xf32>
    %16 = vector.multi_reduction <add>, %15, %cst_5 [1] : vector<64x128xf32> to vector<64xf32>
    %17 = vector.shape_cast %16 : vector<64xf32> to vector<64x1xf32>
    %c0_6 = arith.constant 0 : index
    %c0_7 = arith.constant 0 : index
    %18 = vector.load %arg5[%c0_6, %c0_7] : memref<64x1xf32, #tpu.memory_space<vmem>>, vector<64x1xf32>
    %cst_8 = arith.constant 5.05050528E-4 : f32
    %19 = vector.broadcast %cst_8 : f32 to vector<64x1xf32>
    %20 = arith.mulf %19, %11 : vector<64x1xf32>
    %cst_9 = arith.constant 0.899494946 : f32
    %21 = vector.broadcast %cst_9 : f32 to vector<64x1xf32>
    %22 = arith.mulf %21, %17 : vector<64x1xf32>
    %23 = arith.addf %20, %22 : vector<64x1xf32>
    %24 = arith.addf %18, %23 : vector<64x1xf32>
    %c0_10 = arith.constant 0 : index
    %c0_11 = arith.constant 0 : index
    %25 = vector.load %arg5[%c0_10, %c0_11] : memref<64x1xf32, #tpu.memory_space<vmem>>, vector<64x1xf32>
    tpu.vector_store %arg5[%c0_10, %c0_11], %24 {strides = array<i32>} : memref<64x1xf32, #tpu.memory_space<vmem>>, vector<64x1xf32>,
    %c0_i32_12 = arith.constant 0 : i32
    %26 = arith.cmpi eq, %arg1, %c0_i32_12 : i32
    %27 = arith.extui %26 : i1 to i32
    %c0_i32_13 = arith.constant 0 : i32
    %28 = arith.cmpi ne, %27, %c0_i32_13 : i32
    scf.if %28 {
      %32 = vector.extract_strided_slice %4 {offsets = [0, 0], sizes = [64, 1], strides = [1, 1]} : vector<64x128xf32> to vector<64x1xf32>
      %c0_15 = arith.constant 0 : index
      %c0_16 = arith.constant 0 : index
      %33 = vector.load %arg6[%c0_15, %c0_16] : memref<64x1xf32, #tpu.memory_space<vmem>>, vector<64x1xf32>
      tpu.vector_store %arg6[%c0_15, %c0_16], %32 {strides = array<i32>} : memref<64x1xf32, #tpu.memory_space<vmem>>, vector<64x1xf32>,
    } else {
    }
    %c1_i32 = arith.constant 1 : i32
    %29 = arith.cmpi eq, %arg1, %c1_i32 : i32
    %30 = arith.extui %29 : i1 to i32
    %c0_i32_14 = arith.constant 0 : i32
    %31 = arith.cmpi ne, %30, %c0_i32_14 : i32
    scf.if %31 {
      %c0_i32_15 = arith.constant 0 : i32
      %32 = vector.broadcast %c0_i32_15 : i32 to vector<64x1xi32>
      %33 = arith.cmpi ne, %5, %32 : vector<64x1xi32>
      %c0_16 = arith.constant 0 : index
      %c0_17 = arith.constant 0 : index
      %34 = vector.load %arg5[%c0_16, %c0_17] : memref<64x1xf32, #tpu.memory_space<vmem>>, vector<64x1xf32>
      %cst_18 = arith.constant -0.853909671 : f32
      %35 = vector.broadcast %cst_18 : f32 to vector<64x1xf32>
      %36 = arith.subf %35, %34 : vector<64x1xf32>
      %c0_19 = arith.constant 0 : index
      %c0_20 = arith.constant 0 : index
      %37 = vector.load %arg6[%c0_19, %c0_20] : memref<64x1xf32, #tpu.memory_space<vmem>>, vector<64x1xf32>
      %cst_21 = arith.constant 5.05050528E-4 : f32
      %38 = vector.broadcast %cst_21 : f32 to vector<64x1xf32>
      %39 = arith.mulf %38, %37 : vector<64x1xf32>
      %40 = arith.addf %36, %39 : vector<64x1xf32>
      %cst_22 = arith.constant 0.000000e+00 : f32
      %41 = vector.broadcast %cst_22 : f32 to vector<64x1xf32>
      %42 = arith.select %33, %40, %41 : vector<64x1xi1>, vector<64x1xf32>
      %43 = vector.shape_cast %42 : vector<64x1xf32> to vector<1x64x1xf32>
      %cst_23 = arith.constant dense<0.000000e+00> : vector<1xf32>
      %44 = vector.multi_reduction <add>, %43, %cst_23 [1, 2] : vector<1x64x1xf32> to vector<1xf32>
      %45 = vector.shape_cast %44 : vector<1xf32> to vector<1x1x1xf32>
      %46 = vector.extract %45[0, 0, 0] : f32 from vector<1x1x1xf32>
      %47 = tpu.iota {dimensions = array<i32: 1>} : vector<1x8x128xi32>
      %48 = tpu.iota {dimensions = array<i32: 2>} : vector<1x8x128xi32>
      %c0_i32_24 = arith.constant 0 : i32
      %49 = vector.broadcast %c0_i32_24 : i32 to vector<1x8x128xi32>
      %50 = arith.cmpi eq, %47, %49 : vector<1x8x128xi32>
      %c0_i32_25 = arith.constant 0 : i32
      %51 = vector.broadcast %c0_i32_25 : i32 to vector<1x8x128xi32>
      %52 = arith.cmpi eq, %48, %51 : vector<1x8x128xi32>
      %53 = arith.andi %50, %52 : vector<1x8x128xi1>
      %cst_26 = arith.constant 0.000000e+00 : f32
      %54 = vector.broadcast %46 : f32 to vector<1x8x128xf32>
      %55 = vector.broadcast %cst_26 : f32 to vector<1x8x128xf32>
      %56 = arith.select %53, %54, %55 : vector<1x8x128xi1>, vector<1x8x128xf32>
      %c0_27 = arith.constant 0 : index
      %c0_28 = arith.constant 0 : index
      %c0_29 = arith.constant 0 : index
      %57 = vector.load %arg4[%c0_27, %c0_28, %c0_29] : memref<1x8x128xf32, #tpu.memory_space<vmem>>, vector<1x8x128xf32>
      tpu.vector_store %arg4[%c0_27, %c0_28, %c0_29], %56 {strides = array<i32>} : memref<1x8x128xf32, #tpu.memory_space<vmem>>, vector<1x8x128xf32>,
    } else {
    }
    return
  }
  func.func @transform_0(%arg0: i32, %arg1: i32) -> (i32, i32) {
    %c0_i32 = arith.constant 0 : i32
    return %arg0, %arg1 : i32, i32
  }
  func.func @transform_1(%arg0: i32, %arg1: i32) -> (i32, i32) {
    %c0_i32 = arith.constant 0 : i32
    %c0_i32_0 = arith.constant 0 : i32
    return %arg0, %c0_i32 : i32, i32
  }
  func.func @transform_2(%arg0: i32, %arg1: i32) -> (i32, i32, i32) {
    %c0_i32 = arith.constant 0 : i32
    %c0_i32_0 = arith.constant 0 : i32
    %c0_i32_1 = arith.constant 0 : i32
    return %arg0, %c0_i32, %c0_i32_0 : i32, i32, i32
  }
}

</mosaic_0001>

<bundles_post_ra>
// kernel: tpu_custom_call.1
= control target key start
LH: loop header
LB: loop body
LE: loop exit
PB: predicated region body
PF: predicated region fallthrough
CT: control target
= control target key end

     0   :  { %7 = vsyncpa [#allocation6], 0  ;;  %s1237_s0 = inlined_call_operand.vmem [shape: bf16[128,256], index: 0, kind: input, shape index: {}]   ;;  %s1238_s1 = inlined_call_operand.vmem [shape: s32[128,1], index: 1, kind: input, shape index: {}]   ;;  %s1239_s2 = inlined_call_operand.hbm [shape: f32[2,8,128], index: 2, kind: output, shape index: {}]  }
   0x1   :  { %9 = vsyncpa [#allocation6 + $0x1], 0  ;;  %s904_s9 = smov 0   ;;  %s906_s10 = smov 0  }
   0x2   :  { %s908_s11 = smov 0   ;;  %s910_s12 = smov 0  }
   0x3   :  { %s912_s13 = smov 0   ;;  %s914_s14 = smov 0  }
   0x4   :  { %s916_s15 = smov 0   ;;  %s918_s16 = smov 0  }
   0x5   :  { %s920_s17 = smov 0   ;;  %s922_s18 = smov 0  }
   0x6 LB: > { %s640_s19 = sadd.s32 4294967295, %s885_s18   ;;  %s641_s20 = sadd.s32 4294967294, %s885_s18   ;;  %s885_s18 = sphi %s922_s18, %s15_s18   ;;  %s881_s17 = sphi %s920_s17, %s1251_s17   ;;  %s877_s16 = sphi %s918_s16, %s1250_s16   ;;  %s873_s15 = sphi %s916_s15, %s1249_s15   ;;  %s869_s14 = sphi %s914_s14, %s1248_s14   ;;  %s865_s13 = sphi %s912_s13, %s1247_s13   ;;  %s861_s12 = sphi %s910_s12, %s1246_s12   ;;  %s857_s11 = sphi %s908_s11, %s1245_s11   ;;  %s853_s10 = sphi %s906_s10, %s1244_s10   ;;  %s849_s9 = sphi %s904_s9, %s1243_s9  }
   0x7   : > { %s24_s21 = sadd.s32 1, %s877_s16  ;;  %s27_s22 = sadd.s32 1, %s881_s17 }
   0x8   : > { %p25_p0 = scmp.ge.s32.totalorder %s24_s21, 2  ;;  %s36_s23 = sadd.s32 1, %s865_s13 }
   0x9   : > { %p43_p1 = scmp.ne.s32.totalorder %s865_s13, %s861_s12  ;;  %p44_p2 = scmp.eq.s32.totalorder %s885_s18, 0 }
   0xa   : > { %s1253_s21 = smov (%p25_p0, %s24_s21), 0  ;;  %s1255_s22 = smov (!%p25_p0, %s27_s22), %s881_s17 }
   0xb   : > { %s32_s24 = ssub.s32 %s877_s16, %s1253_s21  ;;  %p967_p3 = por %p44_p2, %p43_p1 }
   0xc   : > { %p29_p4 = scmp.ge.s32.totalorder %s1255_s22, 2  ;;  %s88_s26 = sadd.s32 1, %s857_s11 }
   0xd   : > { %p98_p5 = scmp.ne.s32.totalorder %s857_s11, %s853_s10  ;;  %p99_p6 = scmp.eq.s32.totalorder %s640_s19, 3 }
   0xe   : > { %s1257_s22 = smov (%p29_p4, %s1255_s22), 0  ;;  %p104_p8 = scmp.ne.s32.totalorder %s853_s10, %s849_s9 }
   0xf   : > { %p976_p7 = por %p99_p6, %p98_p5  ;;  %s31_s28 = ssub.s32 %s881_s17, %s1257_s22 }
  0x10   : > { %p105_p9 = scmp.eq.s32.totalorder %s641_s20, 3  ;;  %s33_s29 = sor.u32 %s32_s24, %s31_s28 }
  0x11   : > { %p86_p10 = scmp.eq.s32.totalorder %s31_s28, 0  ;;  %p34_p11 = scmp.eq.s32.totalorder %s33_s29, 0 }
  0x12   : > { %p984_p12 = por %p105_p9, %p104_p8  ;;  %p643_p13 = scmp.ge.s32.totalorder %s885_s18, 4 }
  0x13   : > { %s989_s3 = scalar_select %p86_p10, %s857_s11, %s88_s26  }
  0x14   : > { %s992_s4 = scalar_select %p34_p11, %s865_s13, %s36_s23  }
  0x15   : > { %121 = sbr.rel (%p643_p13) target bundleno = 40 (0x28), region = 16 }
  0x1a   : > { %124 = sbr.rel (!%p967_p3) target bundleno = 40 (0x28), region = 20  ;;  %s126_s5 = sand.u32 (%p967_p3), 1, %s865_s13  }
  0x1b   : > { %s661_s6 = sshll.u32 (%p967_p3), %s881_s17, 4  ;;  %s644_s7 = sshll.u32 (%p967_p3), %s126_s5, 5 }
  0x1c   : > { %s131_s8 = sadd.s32 (%p967_p3), %s877_s16, %s661_s6  ;;  %s128_s23 = scalar_lea.vmem (%p967_p3), [#allocation4], %s644_s7 }
  0x1d   : > { %s647_s19 = sshll.u32 (%p967_p3), %s131_s8, 2 }
  0x1e   : > { %s133_s26 = scalar_lea.vmem (%p967_p3), %s1237_s0, %s647_s19 }
  0x1f   : > { %v150_v0 = vld [vmem:[%s133_s26] sm:$0xf]  ;;  %v152_v1 = vld [vmem:[%s133_s26 + $0x8] sm:$0xf]  ;;  %v154_v2 = vld [vmem:[%s133_s26 + $0x10] sm:$0xf] }
  0x20   : > { %151 = vst [vmem:[%s128_s23] sm:$0xf] %v150_v0  ;;  %v156_v3 = vld [vmem:[%s133_s26 + $0x18] sm:$0xf]  ;;  %v158_v4 = vld [vmem:[%s133_s26 + $0x20] sm:$0xf] }
  0x21   : > { %153 = vst [vmem:[%s128_s23 + $0x4] sm:$0xf] %v152_v1  ;;  %v160_v5 = vld [vmem:[%s133_s26 + $0x28] sm:$0xf]  ;;  %v162_v6 = vld [vmem:[%s133_s26 + $0x30] sm:$0xf] }
  0x22   : > { %155 = vst [vmem:[%s128_s23 + $0x8] sm:$0xf] %v154_v2  ;;  %v164_v7 = vld [vmem:[%s133_s26 + $0x38] sm:$0xf] }
  0x23   : > { %157 = vst [vmem:[%s128_s23 + $0xc] sm:$0xf] %v156_v3 }
  0x24   : > { %159 = vst [vmem:[%s128_s23 + $0x10] sm:$0xf] %v158_v4 }
  0x25   : > { %161 = vst [vmem:[%s128_s23 + $0x14] sm:$0xf] %v160_v5 }
  0x26   : > { %163 = vst [vmem:[%s128_s23 + $0x18] sm:$0xf] %v162_v6 }
  0x27   : > { %165 = vst [vmem:[%s128_s23 + $0x1c] sm:$0xf] %v164_v7 }
  0x28 PF: > { %p648_p0 = scmp.ge.s32.totalorder %s885_s18, 1  ;;  %p213_p1 = scmp.lt.s32.totalorder %s885_s18, 5 }
  0x2a   : > { %p214_p2 = pnand %p648_p0, %p213_p1 }
  0x2b   : > { %s220_s25 = sand.u32 (!%p214_p2), 1, %s861_s12   ;;  %s243_s28 = sand.u32 (!%p214_p2), 1, %s853_s10  }
  0x2c   : > { %217 = sbr.rel (%p214_p2) target bundleno = 608 (0x260), region = 65  ;;  %s649_s29 = sshll.u32 (!%p214_p2), %s220_s25, 5 }
  0x2d   : > { %s1009_s5 = sshll.u32 (!%p214_p2), %s243_s28, 3  ;;  %s1012_s6 = sshll.u32 (!%p214_p2), %s873_s15, 3 }
  0x2e   : > { %p248_p3 = scmp.lt.s32.totalorder (!%p214_p2), %s1012_s6, 15  ;;  %s1021_s26 = scalar_lea.vmem (!%p214_p2), [#allocation4], %s649_s29 }
  0x2f   : > { %s245_s12 = scalar_lea.vmem (!%p214_p2), [#allocation5], %s1009_s5  ;;  %p653_p4 = scmp.ne.s32.totalorder (!%p214_p2), %s869_s14, 0 }
  0x31   : > { %s249_s7 = scalar_select %p248_p3, %s1012_s6, 15 }
  0x32   : > { %256 = sbr.rel (%p653_p4) target bundleno = 72 (0x48), region = 73 }
  0x33   : > { %s652_s8 = sshll.u32 %s249_s7, 3 }
  0x34   : > { %s1019_s24 = scalar_lea.vmem %s1238_s1, %s652_s8 }
  0x37   : > { %vm257_vm0 = vcmask 7168   ;;  %v887_v8 = vmov 0.0  }
  0x38   : > { %258 = vst.msk [vmem:[#allocation2] sm:$0xff] %vm257_vm0, %v887_v8 }
  0x39   : > { %259 = vst.msk [vmem:[#allocation2 + $0x8] sm:$0xff] %vm257_vm0, %v887_v8 }
  0x3a   : > { %260 = vst.msk [vmem:[#allocation2 + $0x10] sm:$0xff] %vm257_vm0, %v887_v8 }
  0x3b   : > { %261 = vst.msk [vmem:[#allocation2 + $0x18] sm:$0xff] %vm257_vm0, %v887_v8 }
  0x3c   : > { %262 = vst.msk [vmem:[#allocation2 + $0x20] sm:$0xff] %vm257_vm0, %v887_v8 }
  0x3d   : > { %263 = vst.msk [vmem:[#allocation2 + $0x28] sm:$0xff] %vm257_vm0, %v887_v8 }
  0x3e   : > { %264 = vst.msk [vmem:[#allocation2 + $0x30] sm:$0xff] %vm257_vm0, %v887_v8 }
  0x3f   : > { %265 = vst.msk [vmem:[#allocation2 + $0x38] sm:$0xff] %vm257_vm0, %v887_v8 }
  0x40   : > { %266 = vst.msk [vmem:[#allocation3] sm:$0xff] %vm257_vm0, %v887_v8 }
  0x41   : > { %267 = vst.msk [vmem:[#allocation3 + $0x8] sm:$0xff] %vm257_vm0, %v887_v8 }
  0x42   : > { %268 = vst.msk [vmem:[#allocation3 + $0x10] sm:$0xff] %vm257_vm0, %v887_v8 }
  0x43   : > { %269 = vst.msk [vmem:[#allocation3 + $0x18] sm:$0xff] %vm257_vm0, %v887_v8 }
  0x44   : > { %270 = vst.msk [vmem:[#allocation3 + $0x20] sm:$0xff] %vm257_vm0, %v887_v8 }
  0x45   : > { %271 = vst.msk [vmem:[#allocation3 + $0x28] sm:$0xff] %vm257_vm0, %v887_v8 }
  0x46   : > { %272 = vst.msk [vmem:[#allocation3 + $0x30] sm:$0xff] %vm257_vm0, %v887_v8 }
  0x47   : > { %273 = vst.msk [vmem:[#allocation3 + $0x38] sm:$0xff] %vm257_vm0, %v887_v8 }
  0x48 PF: > { %v679_v9 = vld [vmem:[%s1021_s26 + $0x10] sm:$0xff]   ;;  %v678_v10 = vld [vmem:[%s1021_s26 + $0x8] sm:$0xff]   ;;  %v663_v11 = vld [vmem:[%s1021_s26] sm:$0xff]   ;;  %v888_v15 = vmov 0   ;;  %s654_s15 = sshll.u32 %s869_s14, 7  ;;  %v308_v42 = vlaneseq  ;;  %vm422_vm9 = vcmask 7168  }
  0x49   : > { %v1046_v12 = vunpack.c.l.bf16 %v679_v9  ;;  %v1048_v13 = vunpack.c.l.bf16 %v678_v10  ;;  %v1050_v14 = vunpack.c.l.bf16 %v663_v11  ;;  %772 = vset.pattern.permute.xlu2 %v888_v15  ;;  %773 = vset.pattern.permute.xlu0 %v888_v15  ;;  %v1055_v16 = vunpack.c.h.bf16 %v679_v9  ;;  %v680_v19 = vld [vmem:[%s1021_s26 + $0x18] sm:$0xff]   ;;  %v1073_v22 = vld [vmem:[%s1019_s24] sm:$0xff]  ;;  %v1077_v25 = vld [vmem:[%s1019_s24 + $0x8] sm:$0xff] }
  0x4a   : > { %774 = vset.pattern.permute.xlu1 %v888_v15  ;;  %v1057_v17 = vunpack.c.h.bf16 %v678_v10  ;;  %v1059_v18 = vunpack.c.h.bf16 %v663_v11  ;;  %v1065_v20 = vunpack.c.h.bf16 %v680_v19  ;;  %v1067_v21 = vunpack.c.l.bf16 %v680_v19  ;;  %v1081_v27 = vld [vmem:[%s1019_s24 + $0x18] sm:$0xff]  ;;  %v1084_v28 = vld [vmem:[%s1019_s24 + $0x10] sm:$0xff]  ;;  %v1089_v31 = vld [vmem:[%s1019_s24 + $0x20] sm:$0xff] }
  0x4b   : > { %318 = vadd.xlane.f32.xlu2 %v1046_v12  ;;  %314 = vadd.xlane.f32.xlu1 %v1048_v13  ;;  %v299_v23 = vstv %s654_s15  ;;  %v1092_v32 = vld [vmem:[%s1019_s24 + $0x28] sm:$0xff]  ;;  %v1097_v35 = vld [vmem:[%s1019_s24 + $0x30] sm:$0xff]  ;;  %v1100_v36 = vld [vmem:[%s1019_s24 + $0x38] sm:$0xff]  ;;  %v1107_v44 = vand.u32 127, %v308_v42 }
  0x4c   : > { %310 = vadd.xlane.f32.xlu0 %v1050_v14  ;;  %v300_v24 = vsub.s32 %v1073_v22, %v299_v23  ;;  %v301_v26 = vsub.s32 %v1077_v25, %v299_v23  ;;  %v303_v29 = vsub.s32 %v1081_v27, %v299_v23  ;;  %v302_v30 = vsub.s32 %v1084_v28, %v299_v23  ;;  %v382_v4 = vld [vmem:[#allocation2] sm:$0xff] }
  0x4d   : > { %v304_v33 = vsub.s32 %v1089_v31, %v299_v23  ;;  %v305_v34 = vsub.s32 %v1092_v32, %v299_v23  ;;  %v306_v37 = vsub.s32 %v1097_v35, %v299_v23  ;;  %v307_v38 = vsub.s32 %v1100_v36, %v299_v23  ;;  %v386_v10 = vld [vmem:[#allocation2 + $0x20] sm:$0xff] }
  0x53   : > { %320 = vadd.xlane.f32.xlu2 %v1055_v16  ;;  %316 = vadd.xlane.f32.xlu1 %v1057_v17 }
  0x54   : > { %312 = vadd.xlane.f32.xlu0 %v1059_v18 }
  0x5b   : > { %324 = vadd.xlane.f32.xlu1 %v1065_v20 }
  0x5c   : > { %322 = vadd.xlane.f32.xlu0 %v1067_v21 }
  0x6b   : > { %327 = vperm.xlu2 %772, %v300_v24  }
  0x70   : > { %330 = vperm.xlu0 %773, %v301_v26   ;;  %v383_v26 = vld [vmem:[#allocation2 + $0x8] sm:$0xff] }
  0x73   : > { %336 = vperm.xlu2 %772, %v303_v29  }
  0x74   : > { %333 = vperm.xlu1 %774, %v302_v30  }
  0x7b   : > { %339 = vperm.xlu2 %772, %v304_v33  }
  0x7c   : > { %342 = vperm.xlu1 %774, %v305_v34  }
  0x83   : > { %345 = vperm.xlu2 %772, %v306_v37  }
  0x84   : > { %348 = vperm.xlu1 %774, %v307_v38   ;;  %v384_v38 = vld [vmem:[#allocation2 + $0x10] sm:$0xff] }
  0xbe   : > { %v319_v39 = vpop.xlane.xlu2 %318  ;;  %v315_v43 = vpop.xlane.xlu1 %314 }
  0xbf   : > { %v311_v40 = vpop.xlane.xlu0 %310  ;;  %v394_v8 = vmul.f32 0.0005050505, %v319_v39  ;;  %v392_v33 = vmul.f32 0.0005050505, %v315_v43  ;;  %v387_v43 = vld [vmem:[#allocation2 + $0x28] sm:$0xff] }
  0xc0   : > { %v390_v2 = vmul.f32 0.0005050505, %v311_v40 }
  0xc6   : > { %v1104_v41 = vpop.xlane.xlu2 %320  ;;  %v317_v48 = vpop.xlane.xlu1 %316 }
  0xc7   : > { %v313_v46 = vpop.xlane.xlu0 %312 }
  0xc8   : > { %v391_v19 = vmul.f32 0.0005050505, %v313_v46 }
  0xce   : > { %v328_v45 = vpop.permute.xlu2 %327  ;;  %v1113_v51 = vpop.xlane.xlu1 %324 }
  0xcf   : > { %vm350_vm1 = vcmp.eq.s32.totalorder %v1107_v44, %v328_v45  ;;  %v1111_v50 = vpop.xlane.xlu0 %322  ;;  %v393_v45 = vmul.f32 0.0005050505, %v317_v48 }
  0xd0   : > { %v358_v47 = vsel %vm350_vm1, %v1050_v14, 0.0 }
  0xd1   : > { %366 = vadd.xlane.f32.xlu0 %v358_v47 }
  0xd6   : > { %v337_v49 = vpop.permute.xlu2 %336 }
  0xd7   : > { %vm353_vm5 = vcmp.eq.s32.totalorder %v1107_v44, %v337_v49 }
  0xd8   : > { %v361_v58 = vsel %vm353_vm5, %v1057_v17, 0.0 }
  0xde   : > { %v340_v52 = vpop.permute.xlu2 %339 }
  0xdf   : > { %vm354_vm2 = vcmp.eq.s32.totalorder %v1107_v44, %v340_v52  ;;  %v385_v52 = vld [vmem:[#allocation2 + $0x18] sm:$0xff] }
  0xe0   : > { %v362_v53 = vsel %vm354_vm2, %v1046_v12, 0.0 }
  0xe1   : > { %374 = vadd.xlane.f32.xlu0 %v362_v53 }
  0xe2   : > { %v331_v54 = vpop.permute.xlu0 %330 }
  0xe3   : > { %vm351_vm3 = vcmp.eq.s32.totalorder %v1107_v44, %v331_v54  ;;  %v395_v54 = vmul.f32 0.0005050505, %v1104_v41 }
  0xe4   : > { %v359_v55 = vsel %vm351_vm3, %v1059_v18, 0.0 }
  0xe5   : > { %368 = vadd.xlane.f32.xlu2 %v359_v55 }
  0xe6   : > { %v334_v56 = vpop.permute.xlu1 %333  ;;  %v346_v59 = vpop.permute.xlu2 %345 }
  0xe7   : > { %vm352_vm4 = vcmp.eq.s32.totalorder %v1107_v44, %v334_v56  ;;  %vm356_vm7 = vcmp.eq.s32.totalorder %v1107_v44, %v346_v59  ;;  %v396_v59 = vmul.f32 0.0005050505, %v1111_v50 }
  0xe8   : > { %v360_v57 = vsel %vm352_vm4, %v1048_v13, 0.0  ;;  %v364_v62 = vsel %vm356_vm7, %v1067_v21, 0.0 }
  0xe9   : > { %370 = vadd.xlane.f32.xlu1 %v360_v57 }
  0xed   : > { %372 = vadd.xlane.f32.xlu2 %v361_v58 }
  0xee   : > { %v343_v60 = vpop.permute.xlu1 %342 }
  0xef   : > { %vm355_vm6 = vcmp.eq.s32.totalorder %v1107_v44, %v343_v60 }
  0xf0   : > { %v363_v61 = vsel %vm355_vm6, %v1055_v16, 0.0 }
  0xf1   : > { %376 = vadd.xlane.f32.xlu1 %v363_v61  ;;  %v388_v61 = vld [vmem:[#allocation2 + $0x30] sm:$0xff] }
  0xf5   : > { %378 = vadd.xlane.f32.xlu2 %v364_v62 }
  0xf6   : > { %v349_v63 = vpop.permute.xlu1 %348 }
  0xf7   : > { %vm357_vm8 = vcmp.eq.s32.totalorder %v1107_v44, %v349_v63 }
  0xf8   : > { %v365_v0 = vsel %vm357_vm8, %v1065_v20, 0.0 }
  0xf9   : > { %380 = vadd.xlane.f32.xlu0 %v365_v0  ;;  %v397_v0 = vmul.f32 0.0005050505, %v1113_v51 }
 0x144   : > { %v367_v1 = vpop.xlane.xlu0 %366 }
 0x145   : > { %v398_v3 = vmul.f32 0.89949495, %v367_v1 }
 0x147   : > { %v406_v5 = vadd.f32 %v398_v3, %v390_v2  ;;  %v389_v2 = vld [vmem:[#allocation2 + $0x38] sm:$0xff] }
 0x149   : > { %v414_v6 = vadd.f32 %v406_v5, %v382_v4 }
 0x14b   : > { %423 = vst.msk [vmem:[#allocation2] sm:$0xff] %vm422_vm9, %v414_v6 }
 0x154   : > { %v375_v7 = vpop.xlane.xlu0 %374 }
 0x155   : > { %v402_v9 = vmul.f32 0.89949495, %v375_v7 }
 0x157   : > { %v410_v11 = vadd.f32 %v402_v9, %v394_v8 }
 0x158   : > { %v369_v15 = vpop.xlane.xlu2 %368 }
 0x159   : > { %v418_v23 = vadd.f32 %v410_v11, %v386_v10  ;;  %v399_v24 = vmul.f32 0.89949495, %v369_v15 }
 0x15b   : > { %427 = vst.msk [vmem:[#allocation2 + $0x20] sm:$0xff] %vm422_vm9, %v418_v23  ;;  %v407_v29 = vadd.f32 %v399_v24, %v391_v19 }
 0x15c   : > { %v371_v30 = vpop.xlane.xlu1 %370 }
 0x15d   : > { %v415_v34 = vadd.f32 %v407_v29, %v383_v26  ;;  %v400_v37 = vmul.f32 0.89949495, %v371_v30 }
 0x15f   : > { %424 = vst.msk [vmem:[#allocation2 + $0x8] sm:$0xff] %vm422_vm9, %v415_v34  ;;  %v408_v40 = vadd.f32 %v400_v37, %v392_v33 }
 0x160   : > { %v373_v39 = vpop.xlane.xlu2 %372 }
 0x161   : > { %v416_v47 = vadd.f32 %v408_v40, %v384_v38  ;;  %v401_v49 = vmul.f32 0.89949495, %v373_v39 }
 0x163   : > { %425 = vst.msk [vmem:[#allocation2 + $0x10] sm:$0xff] %vm422_vm9, %v416_v47  ;;  %v409_v46 = vadd.f32 %v401_v49, %v393_v45 }
 0x164   : > { %v377_v53 = vpop.xlane.xlu1 %376 }
 0x165   : > { %v417_v55 = vadd.f32 %v409_v46, %v385_v52  ;;  %v403_v56 = vmul.f32 0.89949495, %v377_v53 }
 0x167   : > { %426 = vst.msk [vmem:[#allocation2 + $0x18] sm:$0xff] %vm422_vm9, %v417_v55  ;;  %v411_v57 = vadd.f32 %v403_v56, %v395_v54 }
 0x168   : > { %v379_v58 = vpop.xlane.xlu2 %378 }
 0x169   : > { %v419_v60 = vadd.f32 %v411_v57, %v387_v43  ;;  %v404_v48 = vmul.f32 0.89949495, %v379_v58 }
 0x16b   : > { %428 = vst.msk [vmem:[#allocation2 + $0x28] sm:$0xff] %vm422_vm9, %v419_v60  ;;  %v412_v62 = vadd.f32 %v404_v48, %v396_v59 }
 0x16c   : > { %v381_v63 = vpop.xlane.xlu0 %380 }
 0x16d   : > { %v420_v1 = vadd.f32 %v412_v62, %v388_v61  ;;  %v405_v41 = vmul.f32 0.89949495, %v381_v63 }
 0x16f   : > { %429 = vst.msk [vmem:[#allocation2 + $0x30] sm:$0xff] %vm422_vm9, %v420_v1  ;;  %v413_v3 = vadd.f32 %v405_v41, %v397_v0  ;;  %433 = sbr.rel (%p653_p4) target bundleno = 380 (0x17c), region = 77 }
 0x171   : > { %v421_v4 = vadd.f32 %v413_v3, %v389_v2 }
 0x173   : > { %430 = vst.msk [vmem:[#allocation2 + $0x38] sm:$0xff] %vm422_vm9, %v421_v4 }
 0x174   : > { %434 = vst.msk [vmem:[#allocation3] sm:$0xff] %vm422_vm9, %v1050_v14 }
 0x175   : > { %435 = vst.msk [vmem:[#allocation3 + $0x8] sm:$0xff] %vm422_vm9, %v1059_v18 }
 0x176   : > { %436 = vst.msk [vmem:[#allocation3 + $0x10] sm:$0xff] %vm422_vm9, %v1048_v13 }
 0x177   : > { %437 = vst.msk [vmem:[#allocation3 + $0x18] sm:$0xff] %vm422_vm9, %v1057_v17 }
 0x178   : > { %438 = vst.msk [vmem:[#allocation3 + $0x20] sm:$0xff] %vm422_vm9, %v1046_v12 }
 0x179   : > { %439 = vst.msk [vmem:[#allocation3 + $0x28] sm:$0xff] %vm422_vm9, %v1055_v16 }
 0x17a   : > { %440 = vst.msk [vmem:[#allocation3 + $0x30] sm:$0xff] %vm422_vm9, %v1067_v21 }
 0x17b   : > { %441 = vst.msk [vmem:[#allocation3 + $0x38] sm:$0xff] %vm422_vm9, %v1065_v20 }
 0x17c PF: > { %p656_p5 = scmp.ne.s32.totalorder %s869_s14, 1 }
 0x17e   : > { %445 = sbr.rel (%p656_p5) target bundleno = 594 (0x252), region = 81 }
 0x183   : > { %v454_v13 = vld [vmem:[#allocation2] sm:$0xff]  ;;  %v455_v14 = vld [vmem:[#allocation2 + $0x8] sm:$0xff]  ;;  %v456_v18 = vld [vmem:[#allocation2 + $0x10] sm:$0xff]  ;;  %vm446_vm10 = vcmp.ne.s32.totalorder %v1073_v22, 0  ;;  %vm447_vm11 = vcmp.ne.s32.totalorder %v1077_v25, 0  ;;  %vm448_vm12 = vcmp.ne.s32.totalorder %v1084_v28, 0 }
 0x184   : > { %v457_v17 = vld [vmem:[#allocation2 + $0x18] sm:$0xff]  ;;  %v458_v50 = vld [vmem:[#allocation2 + $0x20] sm:$0xff]  ;;  %v459_v51 = vld [vmem:[#allocation2 + $0x28] sm:$0xff]  ;;  %v462_v12 = vsub.f32 -0.8539097, %v454_v13  ;;  %vm449_vm13 = vcmp.ne.s32.totalorder %v1081_v27, 0 }
 0x185   : > { %v470_v16 = vld [vmem:[#allocation3] sm:$0xff]  ;;  %v460_v21 = vld [vmem:[#allocation2 + $0x30] sm:$0xff]  ;;  %v463_v5 = vsub.f32 -0.8539097, %v455_v14  ;;  %v464_v6 = vsub.f32 -0.8539097, %v456_v18 }
 0x186   : > { %v465_v20 = vsub.f32 -0.8539097, %v457_v17  ;;  %v466_v7 = vsub.f32 -0.8539097, %v458_v50  ;;  %v467_v8 = vsub.f32 -0.8539097, %v459_v51 }
 0x187   : > { %v471_v9 = vld [vmem:[#allocation3 + $0x8] sm:$0xff]  ;;  %v472_v10 = vld [vmem:[#allocation3 + $0x10] sm:$0xff]  ;;  %v473_v11 = vld [vmem:[#allocation3 + $0x18] sm:$0xff]  ;;  %v478_v23 = vmul.f32 0.0005050505, %v470_v16  ;;  %vm450_vm14 = vcmp.ne.s32.totalorder %v1089_v31, 0 }
 0x188   : > { %v474_v15 = vld [vmem:[#allocation3 + $0x20] sm:$0xff]  ;;  %v475_v19 = vld [vmem:[#allocation3 + $0x28] sm:$0xff]  ;;  %v461_v24 = vld [vmem:[#allocation2 + $0x38] sm:$0xff]  ;;  %v479_v29 = vmul.f32 0.0005050505, %v471_v9  ;;  %vm451_vm15 = vcmp.ne.s32.totalorder %v1092_v32, 0 }
 0x189   : > { %v476_v26 = vld [vmem:[#allocation3 + $0x30] sm:$0xff]  ;;  %v480_v30 = vmul.f32 0.0005050505, %v472_v10  ;;  %v481_v33 = vmul.f32 0.0005050505, %v473_v11  ;;  %v486_v38 = vadd.f32 %v478_v23, %v462_v12  ;;  %v477_v39 = vld [vmem:[#allocation3 + $0x38] sm:$0xff] }
 0x18a   : > { %v482_v34 = vmul.f32 0.0005050505, %v474_v15  ;;  %v483_v37 = vmul.f32 0.0005050505, %v475_v19  ;;  %v468_v40 = vsub.f32 -0.8539097, %v460_v21  ;;  %v487_v45 = vadd.f32 %v479_v29, %v463_v5 }
 0x18b   : > { %v488_v47 = vadd.f32 %v480_v30, %v464_v6  ;;  %v484_v49 = vmul.f32 0.0005050505, %v476_v26  ;;  %v489_v52 = vadd.f32 %v481_v33, %v465_v20  ;;  %v494_v53 = vsel %vm446_vm10, %v486_v38, 0.0 }
 0x18c   : > { %v490_v46 = vadd.f32 %v482_v34, %v466_v7  ;;  %v469_v54 = vsub.f32 -0.8539097, %v461_v24  ;;  %v495_v55 = vsel %vm447_vm11, %v487_v45, 0.0  ;;  %v485_v27 = vmul.f32 0.0005050505, %v477_v39 }
 0x18d   : > { %v496_v56 = vsel %vm448_vm12, %v488_v47, 0.0  ;;  %v491_v43 = vadd.f32 %v483_v37, %v467_v8  ;;  %v497_v57 = vsel %vm449_vm13, %v489_v52, 0.0  ;;  %v502_v58 = vsel %vm422_vm9, %v494_v53, 0.0 }
 0x18e   : > { %v503_v59 = vsel %vm422_vm9, %v495_v55, 0.0  ;;  %v505_v22 = vsel %vm422_vm9, %v496_v56, 0.0  ;;  %v492_v60 = vadd.f32 %v484_v49, %v468_v40  ;;  %v498_v31 = vsel %vm450_vm14, %v490_v46, 0.0 }
 0x18f   : > { %v504_v48 = vadd.f32 %v503_v59, %v502_v58  ;;  %vm452_vm0 = vcmp.ne.s32.totalorder %v1097_v35, 0  ;;  %v507_v25 = vsel %vm422_vm9, %v497_v57, 0.0  ;;  %v493_v28 = vadd.f32 %v485_v27, %v469_v54 }
 0x190   : > { %v499_v61 = vsel %vm451_vm15, %v491_v43, 0.0  ;;  %vm453_vm1 = vcmp.ne.s32.totalorder %v1100_v36, 0  ;;  %v509_v63 = vsel %vm422_vm9, %v498_v31, 0.0  ;;  %v500_v0 = vsel %vm452_vm0, %v492_v60, 0.0 }
 0x191   : > { %v506_v62 = vadd.f32 %v505_v22, %v504_v48  ;;  %v511_v1 = vsel %vm422_vm9, %v499_v61, 0.0  ;;  %v501_v41 = vsel %vm453_vm1, %v493_v28, 0.0  ;;  %v513_v3 = vsel %vm422_vm9, %v500_v0, 0.0 }
 0x192   : > { %v515_v35 = vsel %vm422_vm9, %v501_v41, 0.0  ;;  %v527_v21 = vshrl.u32 %v308_v42, 7  ;;  %vm529_vm3 = vcmp.eq.s32.totalorder %v1107_v44, 0 }
 0x193   : > { %v508_v32 = vadd.f32 %v507_v25, %v506_v62 }
 0x194   : > { %vm528_vm2 = vcmp.eq.s32.totalorder %v527_v21, 0 }
 0x195   : > { %v510_v2 = vadd.f32 %v509_v63, %v508_v32  ;;  %vm530_vm4 = vmand %vm528_vm2, %vm529_vm3 }
 0x197   : > { %v512_v4 = vadd.f32 %v511_v1, %v510_v2 }
 0x199   : > { %v514_v13 = vadd.f32 %v513_v3, %v512_v4 }
 0x19b   : > { %v516_v14 = vadd.f32 %v515_v35, %v514_v13 }
 0x19d   : > { %517 = vadd.xlane.f32.xlu0 %v516_v14 }
 0x210   : > { %v518_v18 = vpop.xlane.xlu0 %517 }
 0x211   : > { %v519_v17 = vrot.slane %v518_v18, 4 }
 0x213   : > { %v520_v36 = vadd.f32 %v519_v17, %v518_v18 }
 0x215   : > { %v521_v50 = vrot.slane %v520_v36, 2 }
 0x217   : > { %v522_v51 = vadd.f32 %v521_v50, %v520_v36 }
 0x219   : > { %v523_v12 = vrot.slane %v522_v51, 1 }
 0x21b   : > { %v524_v16 = vadd.f32 %v523_v12, %v522_v51 }
 0x21d   : > { %681 = vpush %v524_v16 }
 0x24e   : > { %s682_s14 = spop %681 }
 0x24f   : > { %v531_v5 = vstv %s682_s14 }
 0x250   : > { %v532_v6 = vsel %vm530_vm4, %v531_v5, 0.0 }
 0x251   : > { %533 = vst [vmem:[%s245_s12] sm:$0xff] %v532_v6 }
 0x252 PF: > { %s545_s29 = scalar_lea.hbm %s1239_s2, %s1012_s6  ;;  %s547_s7 = sshll.u32 %s245_s12, 4  ;;  %s548_s7 = int_to_ptr.vmem [resolvable:$true] %s547_s7 }
 0x253   : > { %s549_s8 = sshll.u32 %s545_s29, 4  ;;  %s535_s19 = scalar_lea.sflag [#allocation6], %s243_s28  ;;  %s550_s8 = int_to_ptr.hbm [resolvable:$true] %s549_s8 }
 0x254   : > { %s789_s20 = sshra.s32 %s550_s8, 4  ;;  %s795_s14 = scalar_lea.hbm %s1239_s2, 16  ;;  %s790_s20 = int_to_ptr.hbm [resolvable:$true] %s789_s20 }
 0x255   : > { %s791_s24 = scalar_lea.hbm %s790_s20, 8  ;;  %p796_p10 = scmp.lt.s32.totalorder %s790_s20, %s1239_s2 }
 0x256   : > { %p792_p6 = scmp.ne.s32.totalorder %s790_s20, %s791_s24  ;;  %p797_p11 = scmp.lt.s32.totalorder %s795_s14, %s791_s24 }
 0x258   : > { %p793_p8 = pnand %p792_p6, %p976_p7  ;;  %p798_p13 = por %p797_p11, %p796_p10 }
 0x25a   : > { %p794_p9 = pneg %p793_p8 }
 0x25c   : > { %p799_p0 = pnand %p798_p13, %p794_p9 }
 0x25e   : > { %802 = shalt.err (!%p799_p0)
}
 0x25f   : > { %683 = dma.vmem_to_hbm [thread:$0]  (%p976_p7), %s548_s7, 128, %s550_s8, %s535_s19  }
 0x260 PF: > { %p689_p1 = scmp.ge.s32.totalorder %s885_s18, 2  ;;  %s561_s28 = sand.u32 1, %s849_s9  }
 0x261   : > { %s562_s5 = scalar_lea.sflag [#allocation6], %s561_s28 }
 0x262   : > { %p686_p2 = pnand %p689_p1, %p984_p12 }
 0x264   : > { %p687_p3 = pneg %p686_p2 }
 0x266   : > { %844 = dma.done.wait (%p687_p3), %s562_s5, 128  }
 0x267   : > { %846 = vsyncadd (%p687_p3), %s562_s5, 4294967168  ;;  %s15_s18 = sadd.s32 1, %s885_s18   ;;  %s1243_s9 = smov %s853_s10 }
 0x268   : > { %p12_p4 = scmp.ge.s32.totalorder %s15_s18, 6   ;;  %s1244_s10 = smov %s857_s11 }
 0x269   : > { %s1245_s11 = smov %s989_s3  ;;  %s1246_s12 = smov %s865_s13 }
 0x26a   : > { %s1247_s13 = smov %s992_s4  ;;  %s1248_s14 = smov %s877_s16 }
 0x26b   : > { %s1249_s15 = smov %s881_s17  ;;  %s1250_s16 = smov %s1253_s21 }
 0x26c   : > { %s1251_s17 = smov %s1257_s22  ;;  %14 = sbr.rel (!%p12_p4) target bundleno = 6 (0x6), region = 124 }
 0x271   :  { %568 = vsyncpa [#allocation6], 1 }
 0x272   :  { %570 = vsyncpa [#allocation6 + $0x1], 1 }

</bundles_post_ra>
